<compile_context>
chip_gen: v5e
topology: v5e:2x2
jax: 0.10.0
libtpu: 0.0.40
codegen_flags: <defaults>
</compile_context>

<pallas_src>
import jax
import jax.numpy as jnp
from jax import lax
from jax.experimental import pallas as pl
from jax.experimental.pallas import tpu as pltpu


_PROJ_DIMS = (((1,), (0,)), ((), ()))   # W(Cout,Cin) @ a(Cin,T)  -> (Cout, T)
_KT_Q_DIMS = (((0,), (0,)), ((), ()))   # k(Kc,M)^T   @ q(Kc,T)   -> (M, T)
_V_SM_DIMS = (((1,), (0,)), ((), ()))   # v(Kc,M)     @ sm(M,T)   -> (Kc, T)


# -----------------------------------------------------------------------------
# Pallas kernel: one (batch, spatial-tile) block of the object-attention block.
# -----------------------------------------------------------------------------
def _oab_kernel(x_ref, k_ref, v_ref,
                wq1_ref, bq1_ref, wq2_ref, bq2_ref,
                wu_ref, bu_ref,
                out_ref):
    bf16, f32 = jnp.bfloat16, jnp.float32

    # x stays in its native dtype in HBM; cast per tile inside the kernel.
    xt = x_ref[0].astype(bf16)      # (C, T)   spatial tile
    k = k_ref[0].astype(bf16)       # (Kc, M)  precomputed per batch (f_object)
    v = v_ref[0].astype(bf16)       # (Kc, M)  precomputed per batch (f_down)

    def proj(w_ref, b_ref, a):
        # conv1x1 + folded eval-mode BN + ReLU; bf16 matmul, f32 accumulation.
        r = lax.dot_general(w_ref[...], a, _PROJ_DIMS, preferred_element_type=f32)
        return jnp.maximum(r + b_ref[...], 0.0).astype(bf16)

    # f_pixel -> query (Kc, T); the 1/sqrt(Kc) scale is folded into wq2/bq2.
    q = proj(wq2_ref, bq2_ref, proj(wq1_ref, bq1_ref, xt))

    # sim^T = k^T @ q : (M, T).  Softmax along the sublane (M) axis; the spatial
    # tile T stays on lanes -> lane-dense MXU output and minimal VPU/EUP padding.
    sim = lax.dot_general(k, q, _KT_Q_DIMS, preferred_element_type=f32)
    sim = sim - jnp.max(sim, axis=0, keepdims=True)
    e = jnp.exp(sim)
    sm = (e * pl.reciprocal(jnp.sum(e, axis=0, keepdims=True), approx=True)
          ).astype(bf16)

    # context = v @ sim^T -> (Kc, T)
    ctx = lax.dot_general(v, sm, _V_SM_DIMS, preferred_element_type=f32).astype(bf16)

    # f_up: conv1x1 + BN + ReLU  -> (C, T)
    out = lax.dot_general(wu_ref[...], ctx, _PROJ_DIMS, preferred_element_type=f32)
    out_ref[0] = jnp.maximum(out + bu_ref[...], 0.0).astype(out_ref.dtype)


# -----------------------------------------------------------------------------
# Wrapper: tiling choice + pallas_call.
# -----------------------------------------------------------------------------
def _round_up(a, b):
    return -(-a // b) * b


def _spatial_tiling(hw, cap):
    """Return (tile, padded_hw): tile is lane-aligned (multiple of 128 or the
    whole padded extent) and divides padded_hw; padded_hw >= hw."""
    cap = max(128, (cap // 128) * 128)
    hw_pad = _round_up(hw, 128)
    if hw_pad <= cap:
        return hw_pad, hw_pad
    for t in range(cap, 0, -128):
        if hw_pad % t == 0:
            return t, hw_pad
    return 128, hw_pad  # unreachable: 128 always divides hw_pad


def object_attention_block(x_nchw, proxy_nchw, params, key_channels, scale=1,
                           spatial_tile_cap=2048, out_dtype=jnp.bfloat16):
    # TODO(synk): scale > 1 (MaxPool2d downsample / bilinear upsample) not implemented.
    assert scale == 1
    n, c, h, w = x_nchw.shape
    _, _, hp, wp = proxy_nchw.shape
    hw, m = h * w, hp * wp

    t, hw_pad = _spatial_tiling(hw, spatial_tile_cap)
    n_tiles = hw_pad // t

    (wq1, bq1, wq2, bq2, wk1, bk1, wk2, bk2, wv, bv, wu, bu) = params
    inv_sqrt_kc = float(key_channels) ** -0.5
    wq2s = wq2 * inv_sqrt_kc           # fold attention scale into 2nd query proj
    bq2s = bq2 * inv_sqrt_kc           # (exact: ReLU(s*z) == s*ReLU(z) for s > 0)

    # Hoist the tiny f_object / f_down projections (key / value, (N, Kc, M)) out
    # of the per-tile body; inside the kernel their block index depends only on
    # the batch index so they are only re-DMA'd when the batch changes.
    proxy = proxy_nchw.reshape(n, c, m)
    relu = lambda a: jnp.maximum(a, 0.0)
    host_proj = lambda a, w_, b_: relu(
        jnp.einsum("ncm,kc->nkm", a, w_) + b_[None, :, None])
    kmat = host_proj(host_proj(proxy, wk1, bk1), wk2, bk2).astype(jnp.float32)
    vmat = host_proj(proxy, wv, bv).astype(jnp.float32)
    kc = kmat.shape[1]

    # NCHW -> (N, C, HW) is a free contiguous reshape; keep native dtype (no
    # wrapper-side cast pass).  Pad the spatial axis only when it is not
    # lane-aligned (correctness: padded columns are computed then sliced off).
    x = x_nchw.reshape(n, c, hw)
    if hw_pad != hw:
        x = jnp.pad(x, ((0, 0), (0, 0), (0, hw_pad - hw)))

    wcast = lambda a: a.astype(jnp.bfloat16)                  # weights -> bf16 (MXU)
    bcast = lambda a: a.reshape(-1, 1).astype(jnp.float32)    # biases  -> (Cout, 1) f32
    ws = [wcast(wq1), bcast(bq1), wcast(wq2s), bcast(bq2s), wcast(wu), bcast(bu)]

    full = lambda arr: pl.BlockSpec(arr.shape, lambda b, i: (0,) * arr.ndim)

    out_flat = pl.pallas_call(
        _oab_kernel,
        out_shape=jax.ShapeDtypeStruct((n, c, hw_pad), out_dtype),
        grid_spec=pltpu.PrefetchScalarGridSpec(
            num_scalar_prefetch=0,
            grid=(n, n_tiles),
            in_specs=[
                pl.BlockSpec((1, c, t), lambda b, i: (b, 0, i)),
                # k / v block index depends only on b -> re-DMA'd only per batch.
                pl.BlockSpec((1, kc, m), lambda b, i: (b, 0, 0)),
                pl.BlockSpec((1, kc, m), lambda b, i: (b, 0, 0)),
            ] + [full(a) for a in ws],
            out_specs=pl.BlockSpec((1, c, t), lambda b, i: (b, 0, i)),
        ),
        compiler_params=pltpu.CompilerParams(
            dimension_semantics=("parallel", "parallel"),
            vmem_limit_bytes=40 * 1024 * 1024),
    )(x, kmat, vmat, *ws)

    if hw_pad != hw:
        out_flat = out_flat[:, :, :hw]
    # (N, C, HW) -> NCHW is again a free contiguous reshape.
    return out_flat.reshape(n, c, h, w)


# -----------------------------------------------------------------------------
# Deterministic synthetic parameters (1x1 conv weights + eval-mode BN folded).
# Weights kept in conv orientation (Cout, Cin); biases (Cout,).
# -----------------------------------------------------------------------------
def _fold_conv_bn(w_oc_ic, gamma, beta, mean, var, eps=1e-5):
    s = gamma / jnp.sqrt(var + eps)
    w_eff = w_oc_ic * s[:, None]            # (Cout, Cin)
    b_eff = beta - mean * s                 # (Cout,)
    return w_eff.astype(jnp.float32), b_eff.astype(jnp.float32)


def make_params(rng, in_channels, key_channels):
    def conv_bn(key, cin, cout):
        k1, k2, k3, k4, k5 = jax.random.split(key, 5)
        w = jax.random.normal(k1, (cout, cin), jnp.float32) * 0.2
        gamma = jax.random.uniform(k2, (cout,), jnp.float32, 0.5, 1.5)
        beta = jax.random.normal(k3, (cout,), jnp.float32) * 0.1
        mean = jax.random.normal(k4, (cout,), jnp.float32) * 0.1
        var = jax.random.uniform(k5, (cout,), jnp.float32, 0.5, 1.5)
        return _fold_conv_bn(w, gamma, beta, mean, var)

    keys = jax.random.split(rng, 6)
    wq1, bq1 = conv_bn(keys[0], in_channels, key_channels)   # f_pixel[0]
    wq2, bq2 = conv_bn(keys[1], key_channels, key_channels)  # f_pixel[1]
    wk1, bk1 = conv_bn(keys[2], in_channels, key_channels)   # f_object[0]
    wk2, bk2 = conv_bn(keys[3], key_channels, key_channels)  # f_object[1]
    wv, bv = conv_bn(keys[4], in_channels, key_channels)     # f_down
    wu, bu = conv_bn(keys[5], key_channels, in_channels)     # f_up
    return (wq1, bq1, wq2, bq2, wk1, bk1, wk2, bk2, wv, bv, wu, bu)


# -----------------------------------------------------------------------------
# Pure-JAX f32 reference of the module forward (for verification).
# -----------------------------------------------------------------------------
def reference(x_nchw, proxy_nchw, params, key_channels):
    n, c, h, w = x_nchw.shape
    m = proxy_nchw.shape[2] * proxy_nchw.shape[3]
    x = jnp.transpose(x_nchw.reshape(n, c, h * w), (0, 2, 1))   # (N, L, C)
    p = jnp.transpose(proxy_nchw.reshape(n, c, m), (0, 2, 1))   # (N, M, C)
    (wq1, bq1, wq2, bq2, wk1, bk1, wk2, bk2, wv, bv, wu, bu) = params
    relu = lambda a: jnp.maximum(a, 0.0)
    proj = lambda a, w_, b_: relu(jnp.einsum("nlc,kc->nlk", a, w_) + b_)
    q = proj(proj(x, wq1, bq1), wq2, bq2)
    k = proj(proj(p, wk1, bk1), wk2, bk2)
    v = proj(p, wv, bv)
    sim = jnp.einsum("nlk,nmk->nlm", q, k) * (key_channels ** -0.5)
    sm = jax.nn.softmax(sim, axis=-1)
    ctx = jnp.einsum("nlm,nmk->nlk", sm, v)
    out = relu(jnp.einsum("nlk,ck->nlc", ctx, wu) + bu)
    return jnp.transpose(out, (0, 2, 1)).reshape(n, c, h, w)


def _check(x, proxy, params, key_channels, tile_cap):
    out = object_attention_block(x, proxy, params, key_channels, scale=1,
                                 spatial_tile_cap=tile_cap)
    out = jax.block_until_ready(out).astype(jnp.float32)
    ref = jax.block_until_ready(reference(x, proxy, params, key_channels))
    assert out.shape == x.shape
    # bf16 MXU matmuls, bf16 output, approx reciprocal -> loose tolerance vs f32 ref.
    assert jnp.allclose(out, ref, atol=2e-2, rtol=2e-2), \
        float(jnp.max(jnp.abs(out - ref)))


if __name__ == "__main__":
    in_channels, key_channels = 4, 8
    N, M = 2, 8  # proxy is N x C x M x 1 (object regions)

    root = jax.random.PRNGKey(0)
    kx, kp, kparam, kx2 = jax.random.split(root, 4)
    params = make_params(kparam, in_channels, key_channels)
    proxy = jax.random.normal(kp, (N, in_channels, M, 1), jnp.float32)

    # 1) Lane-aligned spatial extent (HW = 256), small tile cap -> 2-tile grid path.
    x = jax.random.normal(kx, (N, in_channels, 16, 16), jnp.float32)
    _check(x, proxy, params, key_channels, tile_cap=128)

    # 2) Non-lane-aligned spatial extent (HW = 130) -> exercises the pad-to-128 path.
    x2 = jax.random.normal(kx2, (N, in_channels, 10, 13), jnp.float32)
    _check(x2, proxy, params, key_channels, tile_cap=128)

    print("KERNEL_OK")
</pallas_src>

<mosaic_0001>
module attributes {stable_mosaic.version = 11 : i64} {
  func.func @_oab_kernel(%arg0: i32, %arg1: i32, %arg2: memref<1x4x128xf32, #tpu.memory_space<vmem>>, %arg3: memref<1x8x8xf32, #tpu.memory_space<vmem>>, %arg4: memref<1x8x8xf32, #tpu.memory_space<vmem>>, %arg5: memref<8x4xbf16, #tpu.memory_space<vmem>>, %arg6: memref<8x1xf32, #tpu.memory_space<vmem>>, %arg7: memref<8x8xbf16, #tpu.memory_space<vmem>>, %arg8: memref<8x1xf32, #tpu.memory_space<vmem>>, %arg9: memref<4x8xbf16, #tpu.memory_space<vmem>>, %arg10: memref<4x1xf32, #tpu.memory_space<vmem>>, %arg11: memref<1x4x128xbf16, #tpu.memory_space<vmem>>) attributes {dimension_semantics = [#tpu.dimension_semantics<parallel>, #tpu.dimension_semantics<parallel>], iteration_bounds = array<i64: 2, 2>, scalar_prefetch = 0 : i64, scratch_operands = 0 : i64, tpu.core_type = #tpu.core_type<tc>, window_params = [{transform_indices = @transform_0, window_bounds = array<i64: 1, 4, 128>}, {transform_indices = @transform_1, window_bounds = array<i64: 1, 8, 8>}, {transform_indices = @transform_2, window_bounds = array<i64: 1, 8, 8>}, {pipeline_mode = #tpu.pipeline_mode<synchronous>, transform_indices = @transform_3, window_bounds = array<i64: 8, 4>}, {pipeline_mode = #tpu.pipeline_mode<synchronous>, transform_indices = @transform_4, window_bounds = array<i64: 8, 1>}, {pipeline_mode = #tpu.pipeline_mode<synchronous>, transform_indices = @transform_5, window_bounds = array<i64: 8, 8>}, {pipeline_mode = #tpu.pipeline_mode<synchronous>, transform_indices = @transform_6, window_bounds = array<i64: 8, 1>}, {pipeline_mode = #tpu.pipeline_mode<synchronous>, transform_indices = @transform_7, window_bounds = array<i64: 4, 8>}, {pipeline_mode = #tpu.pipeline_mode<synchronous>, transform_indices = @transform_8, window_bounds = array<i64: 4, 1>}, {transform_indices = @transform_9, window_bounds = array<i64: 1, 4, 128>}]} {
    %c0 = arith.constant 0 : index
    %c0_0 = arith.constant 0 : index
    %c0_1 = arith.constant 0 : index
    %0 = vector.load %arg2[%c0, %c0_0, %c0_1] : memref<1x4x128xf32, #tpu.memory_space<vmem>>, vector<1x4x128xf32>
    %1 = vector.shape_cast %0 : vector<1x4x128xf32> to vector<4x128xf32>
    %2 = arith.truncf %1 : vector<4x128xf32> to vector<4x128xbf16>
    %c0_2 = arith.constant 0 : index
    %c0_3 = arith.constant 0 : index
    %c0_4 = arith.constant 0 : index
    %3 = vector.load %arg3[%c0_2, %c0_3, %c0_4] : memref<1x8x8xf32, #tpu.memory_space<vmem>>, vector<1x8x8xf32>
    %4 = vector.shape_cast %3 : vector<1x8x8xf32> to vector<8x8xf32>
    %5 = arith.truncf %4 : vector<8x8xf32> to vector<8x8xbf16>
    %c0_5 = arith.constant 0 : index
    %c0_6 = arith.constant 0 : index
    %c0_7 = arith.constant 0 : index
    %6 = vector.load %arg4[%c0_5, %c0_6, %c0_7] : memref<1x8x8xf32, #tpu.memory_space<vmem>>, vector<1x8x8xf32>
    %7 = vector.shape_cast %6 : vector<1x8x8xf32> to vector<8x8xf32>
    %8 = arith.truncf %7 : vector<8x8xf32> to vector<8x8xbf16>
    %c0_8 = arith.constant 0 : index
    %c0_9 = arith.constant 0 : index
    %9 = vector.load %arg5[%c0_8, %c0_9] : memref<8x4xbf16, #tpu.memory_space<vmem>>, vector<8x4xbf16>
    %cst = arith.constant dense<0.000000e+00> : vector<8x128xf32>
    %10 = tpu.matmul %9, %2, %cst {dimension_numbers = #tpu.dot_dimension_numbers<[1], [0], [0], [1], [0, 0, 1, 1], [], []>} : vector<8x4xbf16>, vector<4x128xbf16>, vector<8x128xf32> -> vector<8x128xf32>
    %c0_10 = arith.constant 0 : index
    %c0_11 = arith.constant 0 : index
    %11 = vector.load %arg6[%c0_10, %c0_11] : memref<8x1xf32, #tpu.memory_space<vmem>>, vector<8x1xf32>
    %12 = vector.broadcast %11 : vector<8x1xf32> to vector<8x128xf32>
    %13 = arith.addf %10, %12 : vector<8x128xf32>
    %cst_12 = arith.constant 0.000000e+00 : f32
    %14 = vector.broadcast %cst_12 : f32 to vector<8x128xf32>
    %15 = arith.maximumf %13, %14 : vector<8x128xf32>
    %16 = arith.truncf %15 : vector<8x128xf32> to vector<8x128xbf16>
    %c0_13 = arith.constant 0 : index
    %c0_14 = arith.constant 0 : index
    %17 = vector.load %arg7[%c0_13, %c0_14] : memref<8x8xbf16, #tpu.memory_space<vmem>>, vector<8x8xbf16>
    %cst_15 = arith.constant dense<0.000000e+00> : vector<8x128xf32>
    %18 = tpu.matmul %17, %16, %cst_15 {dimension_numbers = #tpu.dot_dimension_numbers<[1], [0], [0], [1], [0, 0, 1, 1], [], []>} : vector<8x8xbf16>, vector<8x128xbf16>, vector<8x128xf32> -> vector<8x128xf32>
    %c0_16 = arith.constant 0 : index
    %c0_17 = arith.constant 0 : index
    %19 = vector.load %arg8[%c0_16, %c0_17] : memref<8x1xf32, #tpu.memory_space<vmem>>, vector<8x1xf32>
    %20 = vector.broadcast %19 : vector<8x1xf32> to vector<8x128xf32>
    %21 = arith.addf %18, %20 : vector<8x128xf32>
    %cst_18 = arith.constant 0.000000e+00 : f32
    %22 = vector.broadcast %cst_18 : f32 to vector<8x128xf32>
    %23 = arith.maximumf %21, %22 : vector<8x128xf32>
    %24 = arith.truncf %23 : vector<8x128xf32> to vector<8x128xbf16>
    %cst_19 = arith.constant dense<0.000000e+00> : vector<8x128xf32>
    %25 = tpu.matmul %5, %24, %cst_19 {dimension_numbers = #tpu.dot_dimension_numbers<[0], [0], [1], [1], [0, 1, 1, 1], [], []>} : vector<8x8xbf16>, vector<8x128xbf16>, vector<8x128xf32> -> vector<8x128xf32>
    %cst_20 = arith.constant dense<0xFF800000> : vector<128xf32>
    %26 = vector.multi_reduction <maximumf>, %25, %cst_20 [0] : vector<8x128xf32> to vector<128xf32>
    %27 = vector.shape_cast %26 : vector<128xf32> to vector<1x128xf32>
    %28 = vector.broadcast %27 : vector<1x128xf32> to vector<8x128xf32>
    %29 = arith.subf %25, %28 : vector<8x128xf32>
    %30 = math.exp %29 : vector<8x128xf32>
    %cst_21 = arith.constant dense<0.000000e+00> : vector<128xf32>
    %31 = vector.multi_reduction <add>, %30, %cst_21 [0] : vector<8x128xf32> to vector<128xf32>
    %32 = vector.shape_cast %31 : vector<128xf32> to vector<1x128xf32>
    %33 = tpu.reciprocal %32 {approx = true} : vector<1x128xf32> -> vector<1x128xf32>
    %34 = vector.broadcast %33 : vector<1x128xf32> to vector<8x128xf32>
    %35 = arith.mulf %30, %34 : vector<8x128xf32>
    %36 = arith.truncf %35 : vector<8x128xf32> to vector<8x128xbf16>
    %cst_22 = arith.constant dense<0.000000e+00> : vector<8x128xf32>
    %37 = tpu.matmul %8, %36, %cst_22 {dimension_numbers = #tpu.dot_dimension_numbers<[1], [0], [0], [1], [0, 0, 1, 1], [], []>} : vector<8x8xbf16>, vector<8x128xbf16>, vector<8x128xf32> -> vector<8x128xf32>
    %38 = arith.truncf %37 : vector<8x128xf32> to vector<8x128xbf16>
    %c0_23 = arith.constant 0 : index
    %c0_24 = arith.constant 0 : index
    %39 = vector.load %arg9[%c0_23, %c0_24] : memref<4x8xbf16, #tpu.memory_space<vmem>>, vector<4x8xbf16>
    %cst_25 = arith.constant dense<0.000000e+00> : vector<4x128xf32>
    %40 = tpu.matmul %39, %38, %cst_25 {dimension_numbers = #tpu.dot_dimension_numbers<[1], [0], [0], [1], [0, 0, 1, 1], [], []>} : vector<4x8xbf16>, vector<8x128xbf16>, vector<4x128xf32> -> vector<4x128xf32>
    %c0_26 = arith.constant 0 : index
    %c0_27 = arith.constant 0 : index
    %41 = vector.load %arg10[%c0_26, %c0_27] : memref<4x1xf32, #tpu.memory_space<vmem>>, vector<4x1xf32>
    %42 = vector.broadcast %41 : vector<4x1xf32> to vector<4x128xf32>
    %43 = arith.addf %40, %42 : vector<4x128xf32>
    %cst_28 = arith.constant 0.000000e+00 : f32
    %44 = vector.broadcast %cst_28 : f32 to vector<4x128xf32>
    %45 = arith.maximumf %43, %44 : vector<4x128xf32>
    %46 = arith.truncf %45 : vector<4x128xf32> to vector<4x128xbf16>
    %c0_29 = arith.constant 0 : index
    %c0_30 = arith.constant 0 : index
    %c0_31 = arith.constant 0 : index
    %47 = vector.load %arg11[%c0_29, %c0_30, %c0_31] : memref<1x4x128xbf16, #tpu.memory_space<vmem>>, vector<1x4x128xbf16>
    %48 = vector.shape_cast %47 : vector<1x4x128xbf16> to vector<4x128xbf16>
    %49 = vector.shape_cast %46 : vector<4x128xbf16> to vector<1x4x128xbf16>
    tpu.vector_store %arg11[%c0_29, %c0_30, %c0_31], %49 {strides = array<i32>} : memref<1x4x128xbf16, #tpu.memory_space<vmem>>, vector<1x4x128xbf16>,
    return
  }
  func.func @transform_0(%arg0: i32, %arg1: i32) -> (i32, i32, i32) {
    %c0_i32 = arith.constant 0 : i32
    %c0_i32_0 = arith.constant 0 : i32
    return %arg0, %c0_i32, %arg1 : i32, i32, i32
  }
  func.func @transform_1(%arg0: i32, %arg1: i32) -> (i32, i32, i32) {
    %c0_i32 = arith.constant 0 : i32
    %c0_i32_0 = arith.constant 0 : i32
    %c0_i32_1 = arith.constant 0 : i32
    return %arg0, %c0_i32, %c0_i32_0 : i32, i32, i32
  }
  func.func @transform_2(%arg0: i32, %arg1: i32) -> (i32, i32, i32) {
    %c0_i32 = arith.constant 0 : i32
    %c0_i32_0 = arith.constant 0 : i32
    %c0_i32_1 = arith.constant 0 : i32
    return %arg0, %c0_i32, %c0_i32_0 : i32, i32, i32
  }
  func.func @transform_3(%arg0: i32, %arg1: i32) -> (i32, i32) {
    %c0_i32 = arith.constant 0 : i32
    %c0_i32_0 = arith.constant 0 : i32
    %c0_i32_1 = arith.constant 0 : i32
    return %c0_i32, %c0_i32_0 : i32, i32
  }
  func.func @transform_4(%arg0: i32, %arg1: i32) -> (i32, i32) {
    %c0_i32 = arith.constant 0 : i32
    %c0_i32_0 = arith.constant 0 : i32
    %c0_i32_1 = arith.constant 0 : i32
    return %c0_i32, %c0_i32_0 : i32, i32
  }
  func.func @transform_5(%arg0: i32, %arg1: i32) -> (i32, i32) {
    %c0_i32 = arith.constant 0 : i32
    %c0_i32_0 = arith.constant 0 : i32
    %c0_i32_1 = arith.constant 0 : i32
    return %c0_i32, %c0_i32_0 : i32, i32
  }
  func.func @transform_6(%arg0: i32, %arg1: i32) -> (i32, i32) {
    %c0_i32 = arith.constant 0 : i32
    %c0_i32_0 = arith.constant 0 : i32
    %c0_i32_1 = arith.constant 0 : i32
    return %c0_i32, %c0_i32_0 : i32, i32
  }
  func.func @transform_7(%arg0: i32, %arg1: i32) -> (i32, i32) {
    %c0_i32 = arith.constant 0 : i32
    %c0_i32_0 = arith.constant 0 : i32
    %c0_i32_1 = arith.constant 0 : i32
    return %c0_i32, %c0_i32_0 : i32, i32
  }
  func.func @transform_8(%arg0: i32, %arg1: i32) -> (i32, i32) {
    %c0_i32 = arith.constant 0 : i32
    %c0_i32_0 = arith.constant 0 : i32
    %c0_i32_1 = arith.constant 0 : i32
    return %c0_i32, %c0_i32_0 : i32, i32
  }
  func.func @transform_9(%arg0: i32, %arg1: i32) -> (i32, i32, i32) {
    %c0_i32 = arith.constant 0 : i32
    %c0_i32_0 = arith.constant 0 : i32
    return %arg0, %c0_i32, %arg1 : i32, i32, i32
  }
}

</mosaic_0001>

<bundles_post_ra>
// kernel: tpu_custom_call.1
= control target key start
LH: loop header
LB: loop body
LE: loop exit
PB: predicated region body
PF: predicated region fallthrough
CT: control target
= control target key end

     0   :  { %s1331_s0 = inlined_call_operand.vmem [shape: f32[2,4,256], index: 0, kind: input, shape index: {}]   ;;  %s1332_s1 = inlined_call_operand.hbm [shape: f32[2,8,8], index: 1, kind: input, shape index: {}]   ;;  %s1333_s2 = inlined_call_operand.hbm [shape: f32[2,8,8], index: 2, kind: input, shape index: {}]   ;;  %s1334_s3 = inlined_call_operand.vmem [shape: bf16[8,4], index: 3, kind: input, shape index: {}]   ;;  %s1335_s4 = inlined_call_operand.vmem [shape: f32[8,1], index: 4, kind: input, shape index: {}]   ;;  %s1336_s5 = inlined_call_operand.vmem [shape: bf16[8,8], index: 5, kind: input, shape index: {}]   ;;  %s1337_s6 = inlined_call_operand.vmem [shape: f32[8,1], index: 6, kind: input, shape index: {}]   ;;  %s1338_s7 = inlined_call_operand.vmem [shape: bf16[4,8], index: 7, kind: input, shape index: {}]   ;;  %s1339_s8 = inlined_call_operand.vmem [shape: f32[4,1], index: 8, kind: input, shape index: {}]   ;;  %s1340_s9 = inlined_call_operand.hbm [shape: bf16[2,4,256], index: 9, kind: output, shape index: {}]  }
   0x1   :  { %1350 = sst [smem:[#allocation20_spill]] %s1332_s1 }
   0x2   :  { %1351 = sst [smem:[#allocation21_spill]] %s1338_s7 }
   0x3   :  { %1352 = sst [smem:[#allocation22_spill]] %s1339_s8 }
   0x4   :  { %1353 = sst [smem:[#allocation23_spill]] %s1340_s9 }
   0x5   :  { %14 = vsyncpa [#allocation3], 0 }
   0x6   :  { %16 = vsyncpa [#allocation3 + $0x1], 0 }
   0x7   :  { %17 = vsyncpa [#allocation6], 0 }
   0x8   :  { %19 = vsyncpa [#allocation6 + $0x1], 0 }
   0x9   :  { %20 = vsyncpa [#allocation4], 0 }
   0xa   :  { %22 = vsyncpa [#allocation4 + $0x1], 0  ;;  %s1122_s30 = smov 0   ;;  %s1124_s10 = smov 0  }
   0xb   :  { %s1126_s11 = smov 0   ;;  %s1128_s12 = smov 0  }
   0xc   :  { %s1130_s13 = smov 0   ;;  %s1132_s14 = smov 0  }
   0xd   :  { %s1134_s15 = smov 0   ;;  %s1136_s16 = smov 0  }
   0xe   :  { %s1138_s17 = smov 0   ;;  %s1140_s18 = smov 0  }
   0xf   :  { %s1142_s19 = smov 0  }
  0x10 LB: > { %1354 = sst [smem:[#allocation11_spill]] %s1037_s11  ;;  %s745_s20 = sadd.s32 4294967295, %s1069_s19   ;;  %s1069_s19 = sphi %s1142_s19, %s28_s19   ;;  %s1065_s18 = sphi %s1140_s18, %s1380_s18   ;;  %s1061_s17 = sphi %s1138_s17, %s1379_s17   ;;  %s1057_s16 = sphi %s1136_s16, %s1378_s16   ;;  %s1053_s15 = sphi %s1134_s15, %s1377_s15   ;;  %s1049_s14 = sphi %s1132_s14, %s1376_s14   ;;  %s1045_s13 = sphi %s1130_s13, %s1384_s13   ;;  %s1041_s12 = sphi %s1128_s12, %s1383_s12   ;;  %s1037_s11 = sphi %s1126_s11, %s1374_s11   ;;  %s1033_s10 = sphi %s1124_s10, %s1382_s10   ;;  %s1029_s30 = sphi %s1122_s30, %s1381_s30  }
  0x11   : > { %1355 = sst [smem:[#allocation12_spill]] %s1049_s14  ;;  %s746_s21 = sadd.s32 4294967294, %s1069_s19  }
  0x12   : > { %1356 = sst [smem:[#allocation13_spill]] %s1061_s17  ;;  %s37_s22 = sadd.s32 1, %s1061_s17 }
  0x13   : > { %1357 = sst [smem:[#allocation14_spill]] %s1065_s18  ;;  %s40_s23 = sadd.s32 1, %s1065_s18 }
  0x14   : > { %p38_p0 = scmp.ge.s32.totalorder %s37_s22, 2  ;;  %s75_s24 = sadd.s32 1, %s1049_s14 }
  0x15   : > { %p82_p1 = scmp.ne.s32.totalorder %s1049_s14, %s1045_s13  ;;  %p83_p2 = scmp.eq.s32.totalorder %s1069_s19, 0 }
  0x16   : > { %s1386_s22 = smov (%p38_p0, %s37_s22), 0  ;;  %s1388_s23 = smov (!%p38_p0, %s40_s23), %s1065_s18 }
  0x17   : > { %1358 = sst [smem:[#allocation15_spill]] %s1386_s22  ;;  %p1186_p3 = por %p83_p2, %p82_p1 }
  0x18   : > { %p88_p4 = scmp.ne.s32.totalorder %s1045_s13, %s1041_s12  ;;  %p42_p5 = scmp.ge.s32.totalorder %s1388_s23, 2 }
  0x19   : > { %p89_p6 = scmp.eq.s32.totalorder %s745_s20, 0  ;;  %s251_s26 = ssub.s32 %s1061_s17, %s1386_s22 }
  0x1a   : > { %s255_s27 = sadd.s32 1, %s1037_s11  ;;  %s1390_s23 = smov (%p42_p5, %s1388_s23), 0 }
  0x1b   : > { %1360 = sst [smem:[#allocation16_spill]] %s1390_s23  ;;  %p1196_p7 = por %p89_p6, %p88_p4 }
  0x1c   : > { %p265_p8 = scmp.ne.s32.totalorder %s1037_s11, %s1033_s10  ;;  %s72_s29 = ssub.s32 %s1065_s18, %s1390_s23 }
  0x1d   : > { %p266_p9 = scmp.eq.s32.totalorder %s745_s20, 3  ;;  %p73_p10 = scmp.eq.s32.totalorder %s72_s29, 0 }
  0x1e   : > { %s252_s12 = sor.u32 %s251_s26, %s72_s29  ;;  %p271_p13 = scmp.ne.s32.totalorder %s1033_s10, %s1029_s30 }
  0x1f   : > { %p253_p11 = scmp.eq.s32.totalorder %s252_s12, 0  ;;  %p1204_p12 = por %p266_p9, %p265_p8 }
  0x20   : > { %s1209_s22 = scalar_select %p73_p10, %s1049_s14, %s75_s24  }
  0x21   : > { %s1362_s9 = scalar_select %p1204_p12, 1, 0 }
  0x22   : > { %1364 = sst [smem:[#allocation18_spill]] %s1209_s22  ;;  %p272_p0 = scmp.eq.s32.totalorder %s746_s21, 3 }
  0x23   : > { %1363 = sst [smem:[#allocation17_spill]] %s1362_s9  ;;  %p786_p1 = scmp.lt.s32.totalorder %s1069_s19, 4 }
  0x24   : > { %s1212_s17 = scalar_select %p253_p11, %s1037_s11, %s255_s27  }
  0x25   : > { %p1217_p2 = por %p272_p0, %p271_p13  ;;  %s321_s20 = sand.u32 1, %s1049_s14  }
  0x26   : > { %1365 = sst [smem:[#allocation19_spill]] %s1212_s17  ;;  %s749_s26 = sshll.u32 %s321_s20, 3 }
  0x27   : > { %s750_s29 = sshll.u32 %s1065_s18, 3  ;;  %s1367_s1 = sld [smem:[#allocation20_spill]] }
  0x28   : > { %s325_s24 = scalar_lea.vmem [#allocation2], %s749_s26  ;;  %p776_p4 = pnand %p786_p1, %p1186_p3 }
  0x29   : > { %s333_s22 = sshll.u32 %s325_s24, 4  ;;  %p753_p5 = scmp.ge.s32.totalorder %s1069_s19, 1  ;;  %s334_s22 = int_to_ptr.vmem [resolvable:$true] %s333_s22 }
  0x2a   : > { %p357_p6 = scmp.lt.s32.totalorder %s1069_s19, 5  ;;  %s322_s21 = scalar_lea.sflag [#allocation3], %s321_s20 }
  0x2b   : > { %s348_s18 = scalar_lea.hbm %s1333_s2, %s750_s29  ;;  %s344_s17 = scalar_lea.vmem [#allocation5], %s749_s26 }
  0x2c   : > { %p358_p8 = pnand %p753_p5, %p357_p6  ;;  %s352_s11 = sshll.u32 %s344_s17, 4  ;;  %s353_s11 = int_to_ptr.vmem [resolvable:$true] %s352_s11 }
  0x2d   : > { %s329_s9 = scalar_lea.hbm %s1367_s1, %s750_s29  ;;  %s350_s7 = sshll.u32 %s348_s18, 4  ;;  %s351_s7 = int_to_ptr.hbm [resolvable:$true] %s350_s7 }
  0x2e   : > { %s331_s8 = sshll.u32 %s329_s9, 4  ;;  %s341_s12 = scalar_lea.sflag [#allocation6], %s321_s20  ;;  %s332_s8 = int_to_ptr.hbm [resolvable:$true] %s331_s8 }
  0x2f   : > { %778 = dma.hbm_to_vmem [thread:$0]  (!%p776_p4), %s332_s8, 128, %s334_s22, %s322_s21  }
  0x30   : > { %781 = dma.hbm_to_vmem [thread:$0]  (!%p776_p4), %s351_s7, 128, %s353_s11, %s341_s12  }
  0x31   : > { %361 = sbr.rel (%p358_p8) target bundleno = 800 (0x320), region = 56  ;;  %s363_s9 = sand.u32 (!%p358_p8), 1, %s1045_s13  }
  0x32   : > { %s754_s25 = sshll.u32 (!%p358_p8), %s363_s9, 3  ;;  %s364_s24 = scalar_lea.sflag (!%p358_p8), [#allocation3], %s363_s9 }
  0x33   : > { %s367_s1 = scalar_lea.vmem (!%p358_p8), [#allocation2], %s754_s25 }
  0x36   : > { %1016 = dma.done.wait (%p1196_p7), %s364_s24, 128  }
  0x37   : > { %1018 = vsyncadd (%p1196_p7), %s364_s24, 4294967168  ;;  %s374_s8 = scalar_lea.sflag [#allocation6], %s363_s9  ;;  %s1238_s14 = scalar_lea.vmem [#allocation5], %s754_s25 }
  0x38   : > { %1020 = dma.done.wait (%p1196_p7), %s374_s8, 128  }
  0x39   : > { %1022 = vsyncadd (%p1196_p7), %s374_s8, 4294967168  ;;  %p426_p3 = scmp.lt.s32.totalorder %s1057_s16, 1  ;;  %p428_p9 = scmp.lt.s32.totalorder %s1053_s15, 1  ;;  %v1071_v0 = vmov 0   ;;  %v442_v1 = vld [vmem:[%s1335_s4] sm:$0xff]  ;;  %vm452_vm0 = vcmask 1041408  }
  0x3a   : > { %877 = vset.pattern.permute.xlu0 %v1071_v0  ;;  %v437_v3 = vld [vmem:[%s367_s1] sm:$0xff]  ;;  %vm448_vm1 = vcmask 31744   ;;  %vm482_vm2 = vcmask 1043456   ;;  %vm478_vm3 = vcmask 64512   ;;  %v439_v44 = vld [vmem:[%s1238_s14] sm:$0xff]  ;;  %s423_s26 = sand.u32 1, %s1033_s10  }
  0x3b   : > { %s427_s11 = scalar_select %p426_p3, %s1057_s16, 1  ;;  %445 = vperm.xlu0 %877, %v442_v1   ;;  %v438_v5 = vpack.c.bf16 %v437_v3, %v437_v3  ;;  %v441_v7 = vld [vmem:[%s1334_s3] sm:$0xf]  ;;  %v440_v47 = vpack.c.bf16 %v439_v44, %v439_v44 }
  0x3c   : > { %s429_s17 = scalar_select %p428_p9, %s1053_s15, 1  ;;  %v472_v8 = vld [vmem:[%s1337_s6] sm:$0xff] }
  0x3d   : > { %s757_s18 = sshll.u32 %s427_s11, 1  ;;  %501 = vxpose.xlu1.c.b16.start.end [1/1] (short) (narrow) %v438_v5, 16  ;;  %v471_v16 = vld [vmem:[%s1336_s5] sm:$0xf]  ;;  %s1370_s12 = sld [smem:[#allocation23_spill]] }
  0x3e   : > { %s431_s22 = sadd.s32 %s757_s18, %s429_s17  ;;  %s1368_s17 = sld [smem:[#allocation22_spill]] }
  0x3f   : > { %s758_s20 = sshll.u32 %s431_s22, 2  ;;  %s1369_s22 = sld [smem:[#allocation21_spill]] }
  0x40   : > { %s433_s21 = scalar_lea.vmem %s1331_s0, %s758_s20  ;;  %s765_s20 = sshll.u32 %s1057_s16, 1 }
  0x41   : > { %v435_v2 = vld [vmem:[%s433_s21] sm:$0xf]  ;;  %s614_s29 = sadd.s32 %s1053_s15, %s765_s20  ;;  %s756_s21 = sshll.u32 %s423_s26, 1 }
  0x42   : > { %v436_v4 = vpack.c.bf16 %v435_v2, %v435_v2  ;;  %s766_s27 = sshll.u32 %s614_s29, 1  ;;  %s425_s24 = scalar_lea.vmem [#allocation7], %s756_s21 }
  0x43   : > { %475 = vperm.xlu0 %877, %v472_v8   ;;  %s1371_s9 = smov %s1370_s12  ;;  %s616_s25 = scalar_lea.hbm %s1370_s12, %s766_s27 }
  0x44   : > { %v454_v6 = vsel %vm452_vm0, %v436_v4, 0  ;;  %v575_v48 = vld [vmem:[%s1368_s17] sm:$0xf]  ;;  %s618_s8 = sshll.u32 %s425_s24, 4  ;;  %s620_s11 = sshll.u32 %s616_s25, 4  ;;  %s619_s8 = int_to_ptr.vmem [resolvable:$true] %s618_s8  ;;  %s621_s11 = int_to_ptr.hbm [resolvable:$true] %s620_s11 }
  0x45   : > { %463 = vmatpush.bf16.msra.mxu0 %v454_v6  ;;  %v574_v52 = vld [vmem:[%s1369_s22] sm:$0x3]  ;;  %s604_s15 = scalar_lea.sflag [#allocation4], %s423_s26  ;;  %s957_s16 = sshra.s32 %s621_s11, 4  ;;  %s958_s16 = int_to_ptr.hbm [resolvable:$true] %s957_s16 }
  0x46   : > { %s959_s17 = scalar_lea.hbm %s958_s16, 2  ;;  %s963_s22 = scalar_lea.hbm %s1371_s9, 8 }
  0x47   : > { %p960_p7 = scmp.ne.s32.totalorder %s958_s16, %s959_s17  ;;  %p964_p13 = scmp.lt.s32.totalorder %s958_s16, %s1371_s9 }
  0x48   : > { %759 = vmatmul.msk.bf16.vlgmr.msra.gmra.mxu0 %vm448_vm1, %v441_v7  ;;  %p965_p0 = scmp.lt.s32.totalorder %s963_s22, %s959_s17 }
  0x49   : > { %p961_p10 = pnand %p960_p7, %p1204_p12 }
  0x4a   : > { %p966_p1 = por %p965_p0, %p964_p13 }
  0x4b   : > { %p962_p11 = pneg %p961_p10 }
  0x4d   : > { %p967_p4 = pnand %p966_p1, %p962_p11 }
  0x90   : > { %878 = vset.pattern.permute.xlu1 %v1071_v0 }
  0x97   : > { %578 = vperm.xlu1 %878, %v575_v48  }
  0xad   : > { %v446_v9 = vpop.permute.xlu0 %445 }
  0xb5   : > { %v476_v17 = vpop.permute.xlu0 %475 }
  0xc5   : > { %v465_v10 = vpop.f32.mrf.mxu0 }
  0xc6   : > { %v466_v11 = vadd.f32 %v465_v10, %v446_v9 }
  0xc8   : > { %v469_v12 = vmax.f32 %v466_v11, 0.0 }
  0xca   : > { %v470_v13 = vpack.c.bf16 %v469_v12, %v469_v12 }
  0xcc   : > { %v484_v14 = vsel %vm482_vm2, %v470_v13, 0 }
  0xcd   : > { %v467_v15 = vpop.f32.mrf.mxu0  ;;  %493 = vmatpush.bf16.msra.mxu1 %v484_v14 }
  0xd0   : > { %760 = vmatmul.msk.bf16.vlgmr.msra.gmra.mxu1 %vm478_vm3, %v471_v16 }
  0xe9   : > { %v509_v24 = vpop.trf.xlu1 }
 0x109   : > { %v579_v54 = vpop.permute.xlu1 %578 }
 0x14d   : > { %v495_v18 = vpop.f32.mrf.mxu1 }
 0x14e   : > { %v496_v19 = vadd.f32 %v495_v18, %v476_v17 }
 0x150   : > { %v499_v20 = vmax.f32 %v496_v19, 0.0 }
 0x152   : > { %v500_v21 = vpack.c.bf16 %v499_v20, %v499_v20 }
 0x154   : > { %v521_v22 = vsel %vm482_vm2, %v500_v21, 0 }
 0x155   : > { %v497_v23 = vpop.f32.mrf.mxu1  ;;  %530 = vmatpush.bf16.msra.mxu2 %v521_v22 }
 0x158   : > { %761 = vmatmul.msk.bf16.vlgmr.msra.gmra.mxu2 %vm478_vm3, %v509_v24 }
 0x1db   : > { %v532_v25 = vpop.f32.mrf.mxu2 }
 0x1dc   : > { %v536_v26 = vrot.slane %v532_v25, 4 }
 0x1de   : > { %v537_v27 = vmax.f32 %v532_v25, %v536_v26 }
 0x1e0   : > { %v538_v28 = vrot.slane %v537_v27, 2 }
 0x1e2   : > { %v539_v29 = vmax.f32 %v537_v27, %v538_v28 }
 0x1e3   : > { %v534_v30 = vpop.f32.mrf.mxu2 }
 0x1e4   : > { %v540_v31 = vrot.slane %v539_v29, 1 }
 0x1e6   : > { %v541_v32 = vmax.f32 %v539_v29, %v540_v31 }
 0x1e8   : > { %v542_v33 = vsub.f32 %v532_v25, %v541_v32 }
 0x1ea   : > { %v543_v34 = vmul.f32 1.442695, %v542_v33 }
 0x1ec   : > { %879 = vpow2.f32 %v543_v34 }
 0x1f2   : > { %v880_v35 = vpop.eup %879 }
 0x1f3   : > { %v545_v36 = vrot.slane %v880_v35, 4 }
 0x1f5   : > { %v546_v37 = vadd.f32 %v880_v35, %v545_v36 }
 0x1f7   : > { %v547_v38 = vrot.slane %v546_v37, 2 }
 0x1f9   : > { %v548_v39 = vadd.f32 %v547_v38, %v546_v37 }
 0x1fb   : > { %v549_v40 = vrot.slane %v548_v39, 1 }
 0x1fd   : > { %v550_v41 = vadd.f32 %v549_v40, %v548_v39 }
 0x1ff   : > { %881 = vrcp.f32 %v550_v41 }
 0x205   : > { %v882_v42 = vpop.eup %881 }
 0x206   : > { %v552_v43 = vmul.f32 %v882_v42, %v880_v35 }
 0x208   : > { %v553_v45 = vpack.c.bf16 %v552_v43, %v552_v43 }
 0x20a   : > { %v558_v46 = vsel %vm482_vm2, %v553_v45, 0 }
 0x20b   : > { %567 = vmatpush.bf16.msra.mxu3 %v558_v46 }
 0x20e   : > { %762 = vmatmul.msk.bf16.vlgmr.msra.gmra.mxu3 %vm478_vm3, %v440_v47 }
 0x291   : > { %v569_v49 = vpop.f32.mrf.mxu3 }
 0x292   : > { %v573_v50 = vpack.c.bf16 %v569_v49, %v569_v49 }
 0x294   : > { %v585_v51 = vsel %vm482_vm2, %v573_v50, 0 }
 0x295   : > { %594 = vmatpush.bf16.msrb.mxu0 %v585_v51 }
 0x298   : > { %763 = vmatmul.msk.bf16.vlgmr.msrb.gmra.mxu0 %vm478_vm3, %v574_v52 }
 0x299   : > { %v571_v53 = vpop.f32.mrf.mxu3 }
 0x315   : > { %v596_v55 = vpop.f32.mrf.mxu0 }
 0x316   : > { %v597_v56 = vadd.f32 %v596_v55, %v579_v54 }
 0x318   : > { %v600_v57 = vmax.f32 %v597_v56, 0.0 }
 0x31a   : > { %v601_v58 = vpack.c.bf16 %v600_v57, %v600_v57 }
 0x31c   : > { %602 = vst [vmem:[%s425_s24] sm:$0x3] %v601_v58 }
 0x31d   : > { %v598_v59 = vpop.f32.mrf.mxu0 }
 0x31e   : > { %970 = shalt.err (!%p967_p4)
}
 0x31f   : > { %773 = dma.vmem_to_hbm [thread:$0]  (%p1204_p12), %s619_s8, 32, %s621_s11, %s604_s15  }
 0x320 PF: > { %p787_p5 = scmp.ge.s32.totalorder %s1069_s19, 2  ;;  %s632_s26 = sand.u32 1, %s1029_s30  }
 0x321   : > { %s633_s21 = scalar_lea.sflag [#allocation4], %s632_s26 }
 0x322   : > { %p783_p6 = pnand %p787_p5, %p1217_p2 }
 0x324   : > { %p784_p8 = pneg %p783_p6 }
 0x326   : > { %1024 = dma.done.wait (%p784_p8), %s633_s21, 32  }
 0x327   : > { %1026 = vsyncadd (%p784_p8), %s633_s21, 4294967264  ;;  %s28_s19 = sadd.s32 1, %s1069_s19   ;;  %s1373_s27 = sld [smem:[#allocation11_spill]] }
 0x328   : > { %p25_p3 = scmp.ge.s32.totalorder %s28_s19, 6   ;;  %s1374_s11 = sld [smem:[#allocation19_spill]] }
 0x329   : > { %s1375_s28 = sld [smem:[#allocation12_spill]]  ;;  %s1381_s30 = smov %s1033_s10 }
 0x32a   : > { %s1376_s14 = sld [smem:[#allocation18_spill]]  ;;  %s1383_s12 = smov %s1045_s13 }
 0x32b   : > { %s1377_s15 = sld [smem:[#allocation13_spill]]  ;;  %27 = sbr.rel (!%p25_p3) target bundleno = 16 (0x10), region = 117 }
 0x32c   : > { %s1378_s16 = sld [smem:[#allocation14_spill]] }
 0x32d   : > { %s1379_s17 = sld [smem:[#allocation15_spill]]  ;;  %s1382_s10 = smov %s1373_s27 }
 0x32e   : > { %s1380_s18 = sld [smem:[#allocation16_spill]] }
 0x32f   : > { %s1384_s13 = smov %s1375_s28 }
 0x330   :  { %639 = vsyncpa [#allocation3], 1 }
 0x331   :  { %641 = vsyncpa [#allocation3 + $0x1], 1 }
 0x332   :  { %642 = vsyncpa [#allocation6], 1 }
 0x333   :  { %644 = vsyncpa [#allocation6 + $0x1], 1 }
 0x334   :  { %645 = vsyncpa [#allocation4], 1 }
 0x335   :  { %647 = vsyncpa [#allocation4 + $0x1], 1 }

</bundles_post_ra>
